<compile_context>
chip_gen: v7x
topology: tpu7x:2x2x1
jax: 0.10.0
libtpu: 0.0.40
codegen_flags: <defaults>
</compile_context>

<pallas_src>
import functools

import jax
import jax.numpy as jnp
from jax import lax
from jax.experimental import pallas as pl
from jax.experimental.pallas import tpu as pltpu

N_HIDDEN = 20


def dueling_kernel(x_ref, slab_ref, out_ref, *, n_states, n_hidden, n_actions, n_valid):
    b_pad = out_ref.shape[0]

    # fc1 (+ bias) and ReLU — weights/bias sliced straight off the Ref.
    w1 = slab_ref[:n_states, :n_hidden]                       # (n_states, n_hidden)
    b1 = slab_ref[n_states:n_states + 1, :n_hidden]           # (1, n_hidden)
    h = jnp.dot(
        x_ref[...], w1,
        preferred_element_type=jnp.float32,
        precision=lax.Precision.HIGHEST,
    )
    h = jnp.maximum(h + b1, 0.0)

    # Fused [Advantage | Value] head in a single matmul (+ folded bias row).
    hc = n_hidden
    wh = slab_ref[:n_hidden, hc:hc + n_actions + 1]            # (n_hidden, n_actions+1)
    bh = slab_ref[n_hidden:n_hidden + 1, hc:hc + n_actions + 1]
    head = jnp.dot(
        h, wh,
        preferred_element_type=jnp.float32,
        precision=lax.Precision.HIGHEST,
    )
    head = head + bh

    # Advantage occupies lanes 0..n_actions-1 (lane-aligned with the output
    # tile); Value is the last head lane.
    adv = head[:, :n_actions]
    value = head[:, n_actions:n_actions + 1]

    # torch.mean(Advantage): scalar mean over the whole (B, N_ACTIONS) tensor.
    # If the batch was zero-padded to a sublane multiple, mask the padded rows
    # and divide by the TRUE element count.
    if n_valid == b_pad:
        adv_sum = jnp.sum(adv)
    else:
        row_ids = lax.broadcasted_iota(jnp.int32, adv.shape, 0)
        adv_sum = jnp.sum(jnp.where(row_ids < n_valid, adv, 0.0))
    adv_mean = adv_sum / jnp.float32(n_valid * n_actions)

    out_ref[...] = (value + (adv - adv_mean)).astype(out_ref.dtype)


def dueling_forward(x, params):
    """x: (B, N_STATES) float32 — pass the WHOLE batch; one pallas_call total."""
    slab = params["slab"]
    n_states = params["n_states"]
    n_hidden = params["n_hidden"]
    n_actions = params["n_actions"]

    B = x.shape[0]
    B_pad = ((B + 7) // 8) * 8
    if B_pad != B:
        x = jnp.pad(x, ((0, B_pad - B), (0, 0)))  # zero rows, masked out of the mean

    vmem = pl.BlockSpec(memory_space=pltpu.MemorySpace.VMEM)
    kernel = functools.partial(
        dueling_kernel,
        n_states=n_states, n_hidden=n_hidden, n_actions=n_actions, n_valid=B,
    )

    out = pl.pallas_call(
        kernel,
        out_shape=jax.ShapeDtypeStruct((B_pad, n_actions), jnp.float32),
        in_specs=[vmem, vmem],
        out_specs=vmem,
    )(x, slab)

    return out[:B] if B_pad != B else out


def init_params(key, n_states, n_actions, n_hidden=N_HIDDEN):
    """Init mirroring nn.Linear's U(-1/sqrt(fan_in), 1/sqrt(fan_in)).

    Everything is packed ONCE into a single slab so the kernel has exactly two
    inputs (x + slab):
      lanes [0, n_hidden)                : rows [0, n_states) = W1^T, row n_states = b1
      lanes [n_hidden, n_hidden+n_act+1) : rows [0, n_hidden) = [Wa^T | Wv^T],
                                           row n_hidden       = [ba   | bv ]
    Advantage-first packing keeps adv lane-aligned with the kernel output.
    """
    ks = jax.random.split(key, 6)

    def linear(kw, kb, fan_in, fan_out):
        bound = 1.0 / (fan_in ** 0.5)
        w = jax.random.uniform(kw, (fan_in, fan_out), jnp.float32, -bound, bound)
        b = jax.random.uniform(kb, (1, fan_out), jnp.float32, -bound, bound)
        return w, b

    w1, b1 = linear(ks[0], ks[1], n_states, n_hidden)
    wv, bv = linear(ks[2], ks[3], n_hidden, 1)
    wa, ba = linear(ks[4], ks[5], n_hidden, n_actions)

    rows = max(n_states, n_hidden) + 1
    cols = n_hidden + n_actions + 1
    slab = jnp.zeros((rows, cols), jnp.float32)
    slab = slab.at[:n_states, :n_hidden].set(w1)
    slab = slab.at[n_states:n_states + 1, :n_hidden].set(b1)
    w_head = jnp.concatenate([wa, wv], axis=1)            # (n_hidden, n_actions+1)
    b_head = jnp.concatenate([ba, bv], axis=1)            # (1, n_actions+1)
    slab = slab.at[:n_hidden, n_hidden:].set(w_head)
    slab = slab.at[n_hidden:n_hidden + 1, n_hidden:].set(b_head)

    return {
        "slab": slab,
        "n_states": n_states,
        "n_hidden": n_hidden,
        "n_actions": n_actions,
    }


def reference_forward(x, params):
    slab = params["slab"]
    ns, nh, na = params["n_states"], params["n_hidden"], params["n_actions"]
    w1, b1 = slab[:ns, :nh], slab[ns, :nh]
    wh, bh = slab[:nh, nh:], slab[nh, nh:]
    h = jnp.maximum(jnp.dot(x, w1, precision=lax.Precision.HIGHEST) + b1, 0.0)
    head = jnp.dot(h, wh, precision=lax.Precision.HIGHEST) + bh
    adv, value = head[:, :na], head[:, na:na + 1]
    return value + (adv - jnp.mean(adv))


if __name__ == "__main__":
    key = jax.random.PRNGKey(0)
    k_x, k_x2, k_p = jax.random.split(key, 3)

    N_STATES, N_ACTIONS = 16, 4
    params = init_params(k_p, N_STATES, N_ACTIONS)

    # Full replay-batch in ONE pallas_call (amortizes the fixed launch/DMA cost).
    B = 32
    x = jax.random.normal(k_x, (B, N_STATES), jnp.float32)
    out = jax.block_until_ready(dueling_forward(x, params))
    ref = reference_forward(x, params)
    assert out.shape == (B, N_ACTIONS)
    assert jnp.allclose(out, ref, atol=1e-5, rtol=1e-5)

    # Odd batch -> exercises the zero-pad + masked batch-wide-mean path.
    B2 = 5
    x2 = jax.random.normal(k_x2, (B2, N_STATES), jnp.float32)
    out2 = jax.block_until_ready(dueling_forward(x2, params))
    ref2 = reference_forward(x2, params)
    assert out2.shape == (B2, N_ACTIONS)
    assert jnp.allclose(out2, ref2, atol=1e-5, rtol=1e-5)

    print("KERNEL_OK")
</pallas_src>

<mosaic_0001>
module attributes {stable_mosaic.version = 11 : i64} {
  func.func @dueling_kernel(%arg0: memref<32x16xf32, #tpu.memory_space<vmem>>, %arg1: memref<21x25xf32, #tpu.memory_space<vmem>>, %arg2: memref<32x4xf32, #tpu.memory_space<vmem>>) attributes {dimension_semantics = [], scalar_prefetch = 0 : i64, scratch_operands = 0 : i64, tpu.core_type = #tpu.core_type<tc>} {
    %c0 = arith.constant 0 : index
    %c0_0 = arith.constant 0 : index
    %0 = vector.load %arg1[%c0, %c0_0] : memref<21x25xf32, #tpu.memory_space<vmem>>, vector<16x20xf32>
    %c16 = arith.constant 16 : index
    %c0_1 = arith.constant 0 : index
    %1 = vector.load %arg1[%c16, %c0_1] : memref<21x25xf32, #tpu.memory_space<vmem>>, vector<1x20xf32>
    %c0_2 = arith.constant 0 : index
    %c0_3 = arith.constant 0 : index
    %2 = vector.load %arg0[%c0_2, %c0_3] : memref<32x16xf32, #tpu.memory_space<vmem>>, vector<32x16xf32>
    %cst = arith.constant dense<0.000000e+00> : vector<32x20xf32>
    %3 = tpu.matmul %2, %0, %cst {dimension_numbers = #tpu.dot_dimension_numbers<[1], [0], [0], [1], [0, 0, 1, 1], [], []>, precision = #tpu.contract_precision<fp32>} : vector<32x16xf32>, vector<16x20xf32>, vector<32x20xf32> -> vector<32x20xf32>
    %4 = vector.broadcast %1 : vector<1x20xf32> to vector<32x20xf32>
    %5 = arith.addf %3, %4 : vector<32x20xf32>
    %cst_4 = arith.constant 0.000000e+00 : f32
    %6 = vector.broadcast %cst_4 : f32 to vector<32x20xf32>
    %7 = arith.maximumf %5, %6 : vector<32x20xf32>
    %c0_5 = arith.constant 0 : index
    %c20 = arith.constant 20 : index
    %8 = vector.load %arg1[%c0_5, %c20] : memref<21x25xf32, #tpu.memory_space<vmem>>, vector<20x5xf32>
    %c20_6 = arith.constant 20 : index
    %c20_7 = arith.constant 20 : index
    %9 = vector.load %arg1[%c20_6, %c20_7] : memref<21x25xf32, #tpu.memory_space<vmem>>, vector<1x5xf32>
    %cst_8 = arith.constant dense<0.000000e+00> : vector<32x5xf32>
    %10 = tpu.matmul %7, %8, %cst_8 {dimension_numbers = #tpu.dot_dimension_numbers<[1], [0], [0], [1], [0, 0, 1, 1], [], []>, precision = #tpu.contract_precision<fp32>} : vector<32x20xf32>, vector<20x5xf32>, vector<32x5xf32> -> vector<32x5xf32>
    %11 = vector.broadcast %9 : vector<1x5xf32> to vector<32x5xf32>
    %12 = arith.addf %10, %11 : vector<32x5xf32>
    %13 = vector.extract_strided_slice %12 {offsets = [0, 0], sizes = [32, 4], strides = [1, 1]} : vector<32x5xf32> to vector<32x4xf32>
    %14 = vector.extract_strided_slice %12 {offsets = [0, 4], sizes = [32, 1], strides = [1, 1]} : vector<32x5xf32> to vector<32x1xf32>
    %15 = vector.shape_cast %13 : vector<32x4xf32> to vector<1x32x4xf32>
    %cst_9 = arith.constant dense<0.000000e+00> : vector<1xf32>
    %16 = vector.multi_reduction <add>, %15, %cst_9 [1, 2] : vector<1x32x4xf32> to vector<1xf32>
    %17 = vector.shape_cast %16 : vector<1xf32> to vector<1x1x1xf32>
    %18 = vector.extract %17[0, 0, 0] : f32 from vector<1x1x1xf32>
    %cst_10 = arith.constant 1.280000e+02 : f32
    %19 = arith.divf %18, %cst_10 : f32
    %20 = vector.broadcast %19 : f32 to vector<32x4xf32>
    %21 = arith.subf %13, %20 : vector<32x4xf32>
    %22 = vector.broadcast %14 : vector<32x1xf32> to vector<32x4xf32>
    %23 = arith.addf %22, %21 : vector<32x4xf32>
    %c0_11 = arith.constant 0 : index
    %c0_12 = arith.constant 0 : index
    %24 = vector.load %arg2[%c0_11, %c0_12] : memref<32x4xf32, #tpu.memory_space<vmem>>, vector<32x4xf32>
    tpu.vector_store %arg2[%c0_11, %c0_12], %23 {strides = array<i32>} : memref<32x4xf32, #tpu.memory_space<vmem>>, vector<32x4xf32>,
    return
  }
}

</mosaic_0001>

<bundles_post_ra>
// kernel: tpu_custom_call.1
= control target key start
LH: loop header
LB: loop body
LE: loop exit
PB: predicated region body
PF: predicated region fallthrough
CT: control target
= control target key end

     0   :  { %vm22_vm0 = vcmask 130048   ;;  %s1638_s21 = smov 108   ;;  %vm663_vm1 = vcmask 1043456   ;;  %vm650_vm2 = vcmask 162816   ;;  %vm1267_vm3 = vcmask 31744   ;;  %s1755_s1 = inlined_call_operand.vmem [shape: f32[21,25], index: 1, kind: input, shape index: {}]   ;;  %s1756_s0 = inlined_call_operand.vmem [shape: f32[32,16], index: 0, kind: input, shape index: {}]   ;;  %s1757_s2 = inlined_call_operand.vmem [shape: f32[32,4], index: 2, kind: output, shape index: {}]  }
   0x1   :  { %v11_v0 = vld [vmem:[%s1755_s1] sm:$0xff]  ;;  %v12_v1 = vld [vmem:[%s1755_s1 + $0x8] sm:$0xff]  ;;  %v16_v7 = vld [vmem:[%s1756_s0 + $0x10] sm:$0xff] }
   0x2   :  { %v14_v2 = vld [vmem:[%s1756_s0] sm:$0xff]  ;;  %v36_v3 = vand.u32 4294901760, %v11_v0  ;;  %v39_v4 = vand.u32 4294901760, %v12_v1  ;;  %v15_v6 = vld [vmem:[%s1756_s0 + $0x8] sm:$0xff]  ;;  %v17_v8 = vld [vmem:[%s1756_s0 + $0x18] sm:$0xff]  ;;  %638 = vrot.lane.b32.xlu0 %v11_v0, %s1638_s21  ;;  %v30_v11 = vsel %vm22_vm0, %v16_v7, 0 }
   0x3   :  { %v24_v5 = vsel %vm22_vm0, %v14_v2, 0  ;;  %v27_v10 = vsel %vm22_vm0, %v15_v6, 0  ;;  %v33_v12 = vsel %vm22_vm0, %v17_v8, 0  ;;  %v629_v13 = vld [vmem:[%s1755_s1 + $0x10] sm:$0xf]  ;;  %v122_v19 = vand.u32 4294901760, %v30_v11 }
   0x4   :  { %v1674_v9 = vand.u32 4294901760, %v24_v5  ;;  %v1536_v14 = vpack.c.bf16 %v39_v4, %v36_v3  ;;  %v1679_v15 = vand.u32 4294901760, %v27_v10  ;;  %v144_v16 = vsub.f32 %v11_v0, %v36_v3  ;;  %642 = vrot.lane.b32.xlu1 %v629_v13, %s1638_s21  ;;  %v1325_v0 = vld [vmem:[%s1755_s1 + $0x14] ss:$0 sm:$0xff] }
   0x5   :  { %v151_v17 = vsub.f32 %v12_v1, %v39_v4  ;;  %v132_v20 = vand.u32 4294901760, %v33_v12  ;;  %v123_v25 = vsub.f32 %v30_v11, %v122_v19 }
   0x6   :  { %v103_v18 = vsub.f32 %v24_v5, %v1674_v9  ;;  %1537 = vmatprep.subr.bf16.mxu0 %v1536_v14  ;;  %v113_v21 = vsub.f32 %v27_v10, %v1679_v15  ;;  %v145_v22 = vand.u32 4294901760, %v144_v16  ;;  %640 = vrot.lane.b32.xlu0 %v12_v1, %s1638_s21  ;;  %v1324_v1 = vld [vmem:[%s1755_s1 + $0x10] ss:$0 sm:$0xff] }
   0x7   :  { %v152_v23 = vand.u32 4294901760, %v151_v17  ;;  %1539 = vmatpush3.bf16.msra.mxu0 %v1536_v14  ;;  %v133_v26 = vsub.f32 %v33_v12, %v132_v20  ;;  %v124_v31 = vand.u32 4294901760, %v123_v25  ;;  %v1544_v41 = vpack.c.bf16 %v151_v17, %v144_v16 }
   0x8   :  { %v104_v24 = vand.u32 4294901760, %v103_v18  ;;  %v114_v27 = vand.u32 4294901760, %v113_v21  ;;  %v146_v28 = vsub.f32 %v144_v16, %v145_v22  ;;  %647 = vrot.lane.b32.xlu1 %v1325_v0, %s1638_s21 }
   0x9   :  { %v153_v29 = vsub.f32 %v151_v17, %v152_v23  ;;  %v134_v32 = vand.u32 4294901760, %v133_v26  ;;  %v125_v37 = vsub.f32 %v123_v25, %v124_v31  ;;  %v1552_v44 = vpack.c.bf16 %v152_v23, %v145_v22 }
   0xa   :  { %v105_v30 = vsub.f32 %v103_v18, %v104_v24  ;;  %v115_v33 = vsub.f32 %v113_v21, %v114_v27  ;;  %v147_v34 = vand.u32 4294901760, %v146_v28 }
   0xb   :  { %v154_v35 = vand.u32 4294901760, %v153_v29  ;;  %v135_v38 = vsub.f32 %v133_v26, %v134_v32  ;;  %v126_v42 = vand.u32 4294901760, %v125_v37 }
   0xc   :  { %v106_v36 = vand.u32 4294901760, %v105_v30  ;;  %v116_v39 = vand.u32 4294901760, %v115_v33 }
   0xd   :  { %v1540_v40 = vpack.c.bf16 %v154_v35, %v147_v34  ;;  %v136_v43 = vand.u32 4294901760, %v135_v38 }
   0xe   :  { %1408 = vmatprep.mubr.f32.mxu0 %v106_v36 }
   0xf   :  { %1409 = vmatmul.mubr.f32.vlgmr.msra.gmra.mrb[0].mxu0 %v116_v39  ;;  %1541 = vmatprep.subr.bf16.mxu0 %v1540_v40 }
  0x10   :  { %1543 = vmatpush3.bf16.msra.mxu0 %v1540_v40  ;;  %1411 = vmatprep.mubr.f32.mxu0 %v126_v42  ;;  %v1639_v42 = vmov 4  }
  0x11   :  { %1545 = vmatprep.subr.bf16.mxu0 %v1544_v41  ;;  %1636 = vset.pattern.permute.xlu1 %v1639_v42 }
  0x12   :  { %1637 = vset.pattern.permute.xlu0 %v1639_v42 }
  0x13   :  { %1412 = vmatmul.mubr.f32.gmra.mrb[2].mxu0 %v136_v43 }
  0x14   :  { %1418 = vmatprep.mubr.f32.mxu0 %v1674_v9 }
  0x17   :  { %1419 = vmatmul.mubr.f32.vlgmr.msra.gmra.mrb[0].mxu0 %v1679_v15 }
  0x18   :  { %1547 = vmatpush3.bf16.msra.mxu0 %v1544_v41  ;;  %1421 = vmatprep.mubr.f32.mxu0 %v122_v19 }
  0x19   :  { %1549 = vmatprep.subr.bf16.mxu0 %v1536_v14 }
  0x1b   :  { %1422 = vmatmul.mubr.f32.gmra.mrb[2].mxu0 %v132_v20 }
  0x1c   :  { %1428 = vmatprep.mubr.f32.mxu0 %v103_v18 }
  0x1f   :  { %1429 = vmatmul.mubr.f32.vlgmr.msra.gmra.mrb[0].mxu0 %v113_v21 }
  0x20   :  { %1551 = vmatpush3.bf16.msra.mxu0 %v1536_v14  ;;  %1431 = vmatprep.mubr.f32.mxu0 %v123_v25 }
  0x21   :  { %1553 = vmatprep.subr.bf16.mxu0 %v1552_v44 }
  0x23   :  { %1432 = vmatmul.mubr.f32.gmra.mrb[2].mxu0 %v133_v26 }
  0x24   :  { %1438 = vmatprep.mubr.f32.mxu0 %v104_v24 }
  0x27   :  { %1439 = vmatmul.mubr.f32.vlgmr.msra.gmra.mrb[0].mxu0 %v114_v27 }
  0x28   :  { %1555 = vmatpush3.bf16.msra.mxu0 %v1552_v44  ;;  %1441 = vmatprep.mubr.f32.mxu0 %v124_v31 }
  0x29   :  { %1557 = vmatprep.subr.bf16.mxu0 %v1536_v14 }
  0x2b   :  { %1442 = vmatmul.mubr.f32.gmra.mrb[2].mxu0 %v134_v32 }
  0x2c   :  { %1448 = vmatprep.mubr.f32.mxu0 %v1674_v9 }
  0x2f   :  { %1449 = vmatmul.mubr.f32.vlgmr.msra.gmra.mrb[0].mxu0 %v1679_v15 }
  0x30   :  { %1559 = vmatpush3.bf16.msra.mxu0 %v1536_v14  ;;  %1451 = vmatprep.mubr.f32.mxu0 %v122_v19 }
  0x33   :  { %1452 = vmatmul.mubr.f32.gmra.mrb[2].mxu0 %v132_v20 }
  0x34   :  { %1458 = vmatprep.mubr.f32.mxu0 %v1674_v9 }
  0x37   :  { %1459 = vmatmul.mubr.f32.vlgmr.msra.gmra.mrb[0].mxu0 %v1679_v15 }
  0x38   :  { %1461 = vmatprep.mubr.f32.mxu0 %v122_v19 }
  0x3b   :  { %1462 = vmatmul.mubr.f32.gmra.mrb[2].mxu0 %v132_v20 }
  0x74   :  { %v639_v45 = vpop.permute.xlu0 %638 }
  0x75   :  { %v667_v47 = vand.u32 4294901760, %v639_v45 }
  0x76   :  { %v643_v56 = vpop.permute.xlu1 %642 }
  0x77   :  { %v776_v50 = vsub.f32 %v639_v45, %v667_v47  ;;  %v664_v57 = vsel %vm663_vm1, %v643_v56, 0 }
  0x78   :  { %v641_v46 = vpop.permute.xlu0 %640  ;;  %v1695_v59 = vand.u32 4294901760, %v664_v57 }
  0x79   :  { %v670_v48 = vand.u32 4294901760, %v641_v46  ;;  %v777_v52 = vand.u32 4294901760, %v776_v50 }
  0x7a   :  { %v790_v8 = vsub.f32 %v664_v57, %v1695_v59  ;;  %v648_v43 = vpop.permute.xlu1 %647 }
  0x7b   :  { %v1691_v49 = vpack.c.bf16 %v670_v48, %v667_v47  ;;  %v783_v51 = vsub.f32 %v641_v46, %v670_v48  ;;  %v778_v54 = vsub.f32 %v776_v50, %v777_v52 }
  0x7c   :  { %v791_v20 = vand.u32 4294901760, %v790_v8 }
  0x7d   :  { %1561 = vmatprep.subr.bf16.mxu1 %v1691_v49  ;;  %v784_v53 = vand.u32 4294901760, %v783_v51  ;;  %v1568_v58 = vpack.c.bf16 %v783_v51, %v776_v50  ;;  %v779_v60 = vand.u32 4294901760, %v778_v54 }
  0x7e   :  { %1563 = vmatpush3.bf16.msra.mxu1 %v1691_v49  ;;  %v792_v30 = vsub.f32 %v790_v8, %v791_v20 }
  0x7f   :  { %v785_v55 = vsub.f32 %v783_v51, %v784_v53  ;;  %v1697_v62 = vpack.c.bf16 %v784_v53, %v777_v52  ;;  %1468 = vmatprep.subr.mxu1 %v1695_v59 }
  0x80   :  { %v793_v37 = vand.u32 4294901760, %v792_v30 }
  0x81   :  { %v786_v61 = vand.u32 4294901760, %v785_v55 }
  0x82   :  { %1469 = vmatpush3.msra.mxu1 %v1695_v59 }
  0x83   :  { %v1564_v63 = vpack.c.bf16 %v786_v61, %v779_v60 }
  0x85   :  { %1565 = vmatprep.subr.bf16.mxu1 %v1564_v63 }
 0x10a   :  { %v1460_v2 = vpop.f32.mrb[0].mxu0 }
 0x10b   :  { %v1584_v3 = vadd.f32 %v1460_v2, %v1324_v1  ;;  %v601_v4 = vpop.f32.mrb[1].mxu0 }
 0x10c   :  { %v1585_v5 = vadd.f32 %v1324_v1, %v601_v4 }
 0x10d   :  { %v624_v6 = vmax.f32 %v1584_v3, 0.0 }
 0x10e   :  { %v623_v7 = vmax.f32 %v1585_v5, 0.0  ;;  %v1463_v9 = vpop.f32.mrb[2].mxu0 }
 0x10f   :  { %v655_v10 = vsel %vm650_vm2, %v624_v6, 0  ;;  %v1586_v11 = vadd.f32 %v1463_v9, %v1324_v1  ;;  %v613_v12 = vpop.f32.mrb[3].mxu0 }
 0x110   :  { %v1710_v13 = vand.u32 4294901760, %v655_v10  ;;  %v652_v14 = vsel %vm650_vm2, %v623_v7, 0  ;;  %v1587_v15 = vadd.f32 %v1324_v1, %v613_v12 }
 0x111   :  { %v1713_v16 = vand.u32 4294901760, %v652_v14  ;;  %v626_v17 = vmax.f32 %v1586_v11, 0.0 }
 0x112   :  { %v745_v18 = vsub.f32 %v655_v10, %v1710_v13  ;;  %v625_v19 = vmax.f32 %v1587_v15, 0.0 }
 0x113   :  { %v735_v21 = vsub.f32 %v652_v14, %v1713_v16  ;;  %v661_v22 = vsel %vm650_vm2, %v626_v17, 0 }
 0x114   :  { %v764_v23 = vand.u32 4294901760, %v661_v22  ;;  %v658_v24 = vsel %vm650_vm2, %v625_v19, 0  ;;  %v746_v25 = vand.u32 4294901760, %v745_v18 }
 0x115   :  { %v754_v26 = vand.u32 4294901760, %v658_v24  ;;  %v736_v27 = vand.u32 4294901760, %v735_v21 }
 0x116   :  { %v765_v28 = vsub.f32 %v661_v22, %v764_v23  ;;  %v747_v29 = vsub.f32 %v745_v18, %v746_v25 }
 0x117   :  { %v755_v31 = vsub.f32 %v658_v24, %v754_v26  ;;  %v737_v32 = vsub.f32 %v735_v21, %v736_v27 }
 0x118   :  { %v766_v33 = vand.u32 4294901760, %v765_v28  ;;  %v748_v36 = vand.u32 4294901760, %v747_v29 }
 0x119   :  { %v738_v34 = vand.u32 4294901760, %v737_v32  ;;  %v756_v35 = vand.u32 4294901760, %v755_v31 }
 0x11a   :  { %v767_v38 = vsub.f32 %v765_v28, %v766_v33 }
 0x11b   :  { %1470 = vmatprep.mubr.f32.mxu1 %v738_v34  ;;  %v757_v39 = vsub.f32 %v755_v31, %v756_v35 }
 0x11c   :  { %1471 = vmatmul.mubr.f32.vlgmr.msra.gmra.mrb[0].mxu1 %v748_v36  ;;  %v768_v41 = vand.u32 4294901760, %v767_v38 }
 0x11d   :  { %1567 = vmatpush3.bf16.msra.mxu1 %v1564_v63  ;;  %v758_v40 = vand.u32 4294901760, %v757_v39 }
 0x11e   :  { %1480 = vmatprep.subr.mxu1 %v793_v37 }
 0x11f   :  { %1473 = vmatprep.mubr.f32.mxu1 %v758_v40 }
 0x120   :  { %1474 = vmatmul.mubr.f32.gmra.mrb[2].mxu1 %v768_v41 }
 0x121   :  { %1481 = vmatpush3.msra.mxu1 %v793_v37  ;;  %1482 = vmatprep.mubr.f32.mxu1 %v1713_v16 }
 0x122   :  { %1569 = vmatprep.subr.bf16.mxu1 %v1568_v58 }
 0x124   :  { %1483 = vmatmul.mubr.f32.vlgmr.msra.gmra.mrb[0].mxu1 %v1710_v13 }
 0x125   :  { %1571 = vmatpush3.bf16.msra.mxu1 %v1568_v58  ;;  %1485 = vmatprep.mubr.f32.mxu1 %v754_v26 }
 0x126   :  { %1492 = vmatprep.subr.mxu1 %v790_v8 }
 0x128   :  { %1486 = vmatmul.mubr.f32.gmra.mrb[2].mxu1 %v764_v23 }
 0x129   :  { %1493 = vmatpush3.msra.mxu1 %v790_v8  ;;  %1494 = vmatprep.mubr.f32.mxu1 %v735_v21 }
 0x12a   :  { %1573 = vmatprep.subr.bf16.mxu1 %v1691_v49 }
 0x12c   :  { %1495 = vmatmul.mubr.f32.vlgmr.msra.gmra.mrb[0].mxu1 %v745_v18 }
 0x12d   :  { %1575 = vmatpush3.bf16.msra.mxu1 %v1691_v49  ;;  %1497 = vmatprep.mubr.f32.mxu1 %v755_v31 }
 0x12e   :  { %1504 = vmatprep.subr.mxu1 %v1695_v59 }
 0x130   :  { %1498 = vmatmul.mubr.f32.gmra.mrb[2].mxu1 %v765_v28 }
 0x131   :  { %1505 = vmatpush3.msra.mxu1 %v1695_v59  ;;  %1506 = vmatprep.mubr.f32.mxu1 %v736_v27 }
 0x132   :  { %1577 = vmatprep.subr.bf16.mxu1 %v1697_v62 }
 0x134   :  { %1507 = vmatmul.mubr.f32.vlgmr.msra.gmra.mrb[0].mxu1 %v746_v25 }
 0x135   :  { %1579 = vmatpush3.bf16.msra.mxu1 %v1697_v62  ;;  %1509 = vmatprep.mubr.f32.mxu1 %v756_v35 }
 0x136   :  { %1516 = vmatprep.subr.mxu1 %v791_v20 }
 0x138   :  { %1510 = vmatmul.mubr.f32.gmra.mrb[2].mxu1 %v766_v33 }
 0x139   :  { %1517 = vmatpush3.msra.mxu1 %v791_v20  ;;  %1518 = vmatprep.mubr.f32.mxu1 %v1713_v16 }
 0x13a   :  { %1581 = vmatprep.subr.bf16.mxu1 %v1691_v49 }
 0x13c   :  { %1519 = vmatmul.mubr.f32.vlgmr.msra.gmra.mrb[0].mxu1 %v1710_v13 }
 0x13d   :  { %1583 = vmatpush3.bf16.msra.mxu1 %v1691_v49  ;;  %1521 = vmatprep.mubr.f32.mxu1 %v754_v26 }
 0x13e   :  { %1528 = vmatprep.subr.mxu1 %v1695_v59 }
 0x140   :  { %1522 = vmatmul.mubr.f32.gmra.mrb[2].mxu1 %v764_v23 }
 0x141   :  { %1529 = vmatpush3.msra.mxu1 %v1695_v59  ;;  %1530 = vmatprep.mubr.f32.mxu1 %v1713_v16 }
 0x144   :  { %1531 = vmatmul.mubr.f32.vlgmr.msra.gmra.mrb[0].mxu1 %v1710_v13 }
 0x145   :  { %1533 = vmatprep.mubr.f32.mxu1 %v754_v26 }
 0x148   :  { %1534 = vmatmul.mubr.f32.gmra.mrb[2].mxu1 %v764_v23 }
 0x217   :  { %v1532_v44 = vpop.f32.mrb[0].mxu1 }
 0x218   :  { %v1588_v45 = vadd.f32 %v1532_v44, %v648_v43  ;;  %v1245_v46 = vpop.f32.mrb[1].mxu1 }
 0x219   :  { %v1589_v47 = vadd.f32 %v1245_v46, %v648_v43 }
 0x21a   :  { %v1269_v48 = vsel %vm1267_vm3, %v1588_v45, 0.0 }
 0x21b   :  { %v1268_v49 = vsel %vm1267_vm3, %v1589_v47, 0.0  ;;  %v1535_v50 = vpop.f32.mrb[2].mxu1  ;;  %1294 = vperm.xlu1 %1636, %v1589_v47  }
 0x21c   :  { %v1257_v51 = vpop.f32.mrb[3].mxu1  ;;  %v1590_v52 = vadd.f32 %v1535_v50, %v648_v43  ;;  %v1270_v54 = vadd.f32 %v1269_v48, %v1268_v49 }
 0x21d   :  { %v1591_v53 = vadd.f32 %v1257_v51, %v648_v43 }
 0x21e   :  { %v1273_v57 = vsel %vm1267_vm3, %v1590_v52, 0.0 }
 0x21f   :  { %1299 = vperm.xlu1 %1636, %v1588_v45   ;;  %v1271_v55 = vsel %vm1267_vm3, %v1591_v53, 0.0 }
 0x220   :  { %v1272_v56 = vadd.f32 %v1271_v55, %v1270_v54 }
 0x222   :  { %v1274_v58 = vadd.f32 %v1273_v57, %v1272_v56 }
 0x223   :  { %1304 = vperm.xlu1 %1636, %v1591_v53  }
 0x224   :  { %1275 = vadd.xlane.f32.xlu0 %v1274_v58 }
 0x227   :  { %1309 = vperm.xlu1 %1636, %v1590_v52  }
 0x29a   :  { %v1295_v2 = vpop.permute.xlu1 %1294 }
 0x29e   :  { %v1300_v3 = vpop.permute.xlu1 %1299 }
 0x2a2   :  { %v1305_v4 = vpop.permute.xlu1 %1304 }
 0x2a6   :  { %v1310_v10 = vpop.permute.xlu1 %1309 }
 0x2b1   :  { %v1276_v59 = vpop.xlane.xlu0 %1275 }
 0x2b2   :  { %v1277_v60 = vrot.slane %v1276_v59, 4 }
 0x2b4   :  { %v1278_v61 = vadd.f32 %v1277_v60, %v1276_v59 }
 0x2b6   :  { %v1279_v62 = vrot.slane %v1278_v61, 2 }
 0x2b8   :  { %v1280_v63 = vadd.f32 %v1279_v62, %v1278_v61 }
 0x2ba   :  { %v1281_v0 = vrot.slane %v1280_v63, 1 }
 0x2bc   :  { %v1282_v1 = vadd.f32 %v1281_v0, %v1280_v63 }
 0x2be   :  { %1632 = vpush %v1282_v1 }
 0x2ef   :  { %s1633_s1 = spop %1632 }
 0x2f0   :  { %s1286_s27 = smul.f32 0.0078125, %s1633_s1 }
 0x2f2   :  { %v1287_v5 = vstv %s1286_s27 }
 0x2f3   :  { %v1288_v6 = vsub.f32 %v1589_v47, %v1287_v5  ;;  %v1289_v7 = vsub.f32 %v1588_v45, %v1287_v5  ;;  %v1290_v8 = vsub.f32 %v1591_v53, %v1287_v5  ;;  %v1291_v9 = vsub.f32 %v1590_v52, %v1287_v5 }
 0x2f5   :  { %v1312_v11 = vadd.f32 %v1295_v2, %v1288_v6  ;;  %v1313_v12 = vadd.f32 %v1300_v3, %v1289_v7  ;;  %v1314_v13 = vadd.f32 %v1305_v4, %v1290_v8  ;;  %v1315_v14 = vadd.f32 %v1310_v10, %v1291_v9 }
 0x2f7   :  { %1316 = vst.msk [vmem:[%s1757_s2] sm:$0xff] %vm1267_vm3, %v1312_v11  ;;  %1317 = vst.msk [vmem:[%s1757_s2 + $0x8] sm:$0xff] %vm1267_vm3, %v1313_v12 }
 0x2f8   :  { %1318 = vst.msk [vmem:[%s1757_s2 + $0x10] sm:$0xff] %vm1267_vm3, %v1314_v13  ;;  %1319 = vst.msk [vmem:[%s1757_s2 + $0x18] sm:$0xff] %vm1267_vm3, %v1315_v14 }

</bundles_post_ra>
